<compile_context>
chip_gen: v6e
topology: v6e:2x2x1
jax: 0.10.0
libtpu: 0.0.40
codegen_flags: <defaults>
</compile_context>

<pallas_src>
import jax
import jax.numpy as jnp
from jax.experimental import pallas as pl
from jax.experimental.pallas import tpu as pltpu

LANE = 128  # uniform padded feature width (one lane tile)


def generator_kernel(z_ref, w_ref, b_ref, out_ref):
    """Fused forward for one batch tile.

    z_ref  : (TB, 128)      bf16 activations (zero-padded latent).
    w_ref  : (L, 128, 128)  bf16 resident weight stack [fc6, fc5, ..., fc1].
    b_ref  : (L, 1, 128)    f32  resident bias stack.
    out_ref: (TB, 128)      f32  output tile (zero-padded x_dim).
    """
    n_layers = w_ref.shape[0]
    h = z_ref[...]                                            # bf16 (TB, 128)

    # Hidden layers: Linear + ReLU.  Static Python unroll -> one straight-line
    # schedule; w_ref[i] / b_ref[i] are static slices of resident VMEM tiles.
    for i in range(n_layers - 1):
        acc = jnp.dot(h, w_ref[i], preferred_element_type=jnp.float32)
        acc = acc + b_ref[i]                                  # (1,128) broadcast
        h = jnp.maximum(acc, 0.0).astype(jnp.bfloat16)

    # Final layer: Linear only, f32 output.
    acc = jnp.dot(h, w_ref[n_layers - 1], preferred_element_type=jnp.float32)
    out_ref[...] = acc + b_ref[n_layers - 1]


def generator_forward(z, params, *, tile_batch=512):
    """Run the fused Pallas generator.

    z      : (B, h_dim6) f32 latent codes.
    params : list of (W, b) with W (in, out) f32 and b (1, out) f32,
             ordered [fc6, fc5, fc4, fc3, fc2, fc1]  (h_dim6 > 0 branch).
    """
    B, in_dim = z.shape
    n = len(params)
    x_dim = params[-1][0].shape[1]
    assert in_dim <= LANE and all(
        w.shape[0] <= LANE and w.shape[1] <= LANE for w, _ in params
    ), "generator_forward assumes every layer dim fits one 128-lane tile"

    # Pack all weights/biases into single resident stacks (weights -> bf16).
    w_stack = jnp.zeros((n, LANE, LANE), jnp.float32)
    b_stack = jnp.zeros((n, 1, LANE), jnp.float32)
    for i, (w, b) in enumerate(params):
        w_stack = w_stack.at[i, :w.shape[0], :w.shape[1]].set(w)
        b_stack = b_stack.at[i, 0, :b.shape[-1]].set(b.reshape(-1))
    w_stack = w_stack.astype(jnp.bfloat16)

    def round_up(x, m):
        return ((x + m - 1) // m) * m

    # Batch tile: clamp to the (8-aligned) batch so tiny batches don't over-pad.
    TB = min(int(tile_batch), round_up(B, 8))
    B_pad = round_up(B, TB)

    # Pad batch + latent lanes; stream activations as bf16 (halves input DMA).
    z_pad = (jnp.zeros((B_pad, LANE), jnp.float32)
             .at[:B, :in_dim].set(z)
             .astype(jnp.bfloat16))

    batch_tile = lambda i: (i, 0)        # activations march along the batch
    resident_w = lambda i: (0, 0, 0)     # weight/bias stacks: same block every step

    out_pad = pl.pallas_call(
        generator_kernel,
        out_shape=jax.ShapeDtypeStruct((B_pad, LANE), jnp.float32),
        grid=(B_pad // TB,),
        in_specs=[
            pl.BlockSpec((TB, LANE), batch_tile),
            pl.BlockSpec((n, LANE, LANE), resident_w),
            pl.BlockSpec((n, 1, LANE), resident_w),
        ],
        out_specs=pl.BlockSpec((TB, LANE), batch_tile),
        compiler_params=pltpu.CompilerParams(
            dimension_semantics=("parallel",)),
    )(z_pad, w_stack, b_stack)

    return out_pad[:B, :x_dim]


def init_linear_params(key, in_dim, out_dim):
    """torch.nn.Linear-style init: U(-1/sqrt(in), 1/sqrt(in)). W stored as (in, out)."""
    kw, kb = jax.random.split(key)
    bound = 1.0 / jnp.sqrt(jnp.float32(in_dim))
    w = jax.random.uniform(kw, (in_dim, out_dim), jnp.float32, -bound, bound)
    b = jax.random.uniform(kb, (1, out_dim), jnp.float32, -bound, bound)
    return w, b


def reference_forward(z, params, compute_dtype=jnp.float32):
    """Pure-JAX reference matching the PyTorch forward (h_dim6 > 0 branch).

    compute_dtype controls the matmul operand precision so the reference can
    mirror the kernel's bf16-operand / f32-accumulate math exactly.
    """
    h = z
    n = len(params)
    for i, (w, b) in enumerate(params):
        h = jnp.dot(h.astype(compute_dtype), w.astype(compute_dtype),
                    preferred_element_type=jnp.float32) + b.reshape(1, -1)
        if i < n - 1:
            h = jnp.maximum(h, 0.0)
    return h


if __name__ == "__main__":
    # Module dims (h_dim6 > 0 branch of the PyTorch forward is exercised).
    x_dim, h1, h2, h3, h4, h5, h6 = 64, 48, 40, 32, 24, 16, 8
    batch = 256
    tile_batch = 128   # two 128-row batch tiles -> exercises the grid

    key = jax.random.PRNGKey(0)
    keys = jax.random.split(key, 7)

    # fc6: h6->h5, fc5: h5->h4, fc4: h4->h3, fc3: h3->h2, fc2: h2->h1, fc1: h1->x_dim
    layer_dims = [(h6, h5), (h5, h4), (h4, h3), (h3, h2), (h2, h1), (h1, x_dim)]
    params = [init_linear_params(keys[i], din, dout)
              for i, (din, dout) in enumerate(layer_dims)]

    z = jax.random.normal(keys[6], (batch, h6), jnp.float32)

    out = jax.block_until_ready(generator_forward(z, params, tile_batch=tile_batch))

    # Reference with matching bf16-operand / f32-accumulate math.
    ref = reference_forward(z, params, compute_dtype=jnp.bfloat16)
    assert out.shape == (batch, x_dim)
    assert jnp.allclose(out, ref, atol=1e-2, rtol=1e-2), \
        "Pallas output mismatch vs bf16 reference"

    print("KERNEL_OK")
</pallas_src>

<mosaic_0001>
module attributes {stable_mosaic.version = 11 : i64} {
  func.func @generator_kernel(%arg0: i32, %arg1: memref<128x128xbf16, #tpu.memory_space<vmem>>, %arg2: memref<6x128x128xbf16, #tpu.memory_space<vmem>>, %arg3: memref<6x1x128xf32, #tpu.memory_space<vmem>>, %arg4: memref<128x128xf32, #tpu.memory_space<vmem>>) attributes {dimension_semantics = [#tpu.dimension_semantics<parallel>], iteration_bounds = array<i64: 2>, scalar_prefetch = 0 : i64, scratch_operands = 0 : i64, tpu.core_type = #tpu.core_type<tc>, window_params = [{transform_indices = @transform_0, window_bounds = array<i64: 128, 128>}, {pipeline_mode = #tpu.pipeline_mode<synchronous>, transform_indices = @transform_1, window_bounds = array<i64: 6, 128, 128>}, {pipeline_mode = #tpu.pipeline_mode<synchronous>, transform_indices = @transform_2, window_bounds = array<i64: 6, 1, 128>}, {transform_indices = @transform_3, window_bounds = array<i64: 128, 128>}]} {
    %c0 = arith.constant 0 : index
    %c0_0 = arith.constant 0 : index
    %0 = vector.load %arg1[%c0, %c0_0] : memref<128x128xbf16, #tpu.memory_space<vmem>>, vector<128x128xbf16>
    %c0_1 = arith.constant 0 : index
    %c0_2 = arith.constant 0 : index
    %c0_3 = arith.constant 0 : index
    %1 = vector.load %arg2[%c0_1, %c0_2, %c0_3] : memref<6x128x128xbf16, #tpu.memory_space<vmem>>, vector<1x128x128xbf16>
    %2 = vector.shape_cast %1 : vector<1x128x128xbf16> to vector<128x128xbf16>
    %cst = arith.constant dense<0.000000e+00> : vector<128x128xf32>
    %3 = tpu.matmul %0, %2, %cst {dimension_numbers = #tpu.dot_dimension_numbers<[1], [0], [0], [1], [0, 0, 1, 1], [], []>} : vector<128x128xbf16>, vector<128x128xbf16>, vector<128x128xf32> -> vector<128x128xf32>
    %c0_4 = arith.constant 0 : index
    %c0_5 = arith.constant 0 : index
    %c0_6 = arith.constant 0 : index
    %4 = vector.load %arg3[%c0_4, %c0_5, %c0_6] : memref<6x1x128xf32, #tpu.memory_space<vmem>>, vector<1x1x128xf32>
    %5 = vector.shape_cast %4 : vector<1x1x128xf32> to vector<1x128xf32>
    %6 = vector.broadcast %5 : vector<1x128xf32> to vector<128x128xf32>
    %7 = arith.addf %3, %6 : vector<128x128xf32>
    %cst_7 = arith.constant 0.000000e+00 : f32
    %8 = vector.broadcast %cst_7 : f32 to vector<128x128xf32>
    %9 = arith.maximumf %7, %8 : vector<128x128xf32>
    %10 = arith.truncf %9 : vector<128x128xf32> to vector<128x128xbf16>
    %c1 = arith.constant 1 : index
    %c0_8 = arith.constant 0 : index
    %c0_9 = arith.constant 0 : index
    %11 = vector.load %arg2[%c1, %c0_8, %c0_9] : memref<6x128x128xbf16, #tpu.memory_space<vmem>>, vector<1x128x128xbf16>
    %12 = vector.shape_cast %11 : vector<1x128x128xbf16> to vector<128x128xbf16>
    %cst_10 = arith.constant dense<0.000000e+00> : vector<128x128xf32>
    %13 = tpu.matmul %10, %12, %cst_10 {dimension_numbers = #tpu.dot_dimension_numbers<[1], [0], [0], [1], [0, 0, 1, 1], [], []>} : vector<128x128xbf16>, vector<128x128xbf16>, vector<128x128xf32> -> vector<128x128xf32>
    %c1_11 = arith.constant 1 : index
    %c0_12 = arith.constant 0 : index
    %c0_13 = arith.constant 0 : index
    %14 = vector.load %arg3[%c1_11, %c0_12, %c0_13] : memref<6x1x128xf32, #tpu.memory_space<vmem>>, vector<1x1x128xf32>
    %15 = vector.shape_cast %14 : vector<1x1x128xf32> to vector<1x128xf32>
    %16 = vector.broadcast %15 : vector<1x128xf32> to vector<128x128xf32>
    %17 = arith.addf %13, %16 : vector<128x128xf32>
    %cst_14 = arith.constant 0.000000e+00 : f32
    %18 = vector.broadcast %cst_14 : f32 to vector<128x128xf32>
    %19 = arith.maximumf %17, %18 : vector<128x128xf32>
    %20 = arith.truncf %19 : vector<128x128xf32> to vector<128x128xbf16>
    %c2 = arith.constant 2 : index
    %c0_15 = arith.constant 0 : index
    %c0_16 = arith.constant 0 : index
    %21 = vector.load %arg2[%c2, %c0_15, %c0_16] : memref<6x128x128xbf16, #tpu.memory_space<vmem>>, vector<1x128x128xbf16>
    %22 = vector.shape_cast %21 : vector<1x128x128xbf16> to vector<128x128xbf16>
    %cst_17 = arith.constant dense<0.000000e+00> : vector<128x128xf32>
    %23 = tpu.matmul %20, %22, %cst_17 {dimension_numbers = #tpu.dot_dimension_numbers<[1], [0], [0], [1], [0, 0, 1, 1], [], []>} : vector<128x128xbf16>, vector<128x128xbf16>, vector<128x128xf32> -> vector<128x128xf32>
    %c2_18 = arith.constant 2 : index
    %c0_19 = arith.constant 0 : index
    %c0_20 = arith.constant 0 : index
    %24 = vector.load %arg3[%c2_18, %c0_19, %c0_20] : memref<6x1x128xf32, #tpu.memory_space<vmem>>, vector<1x1x128xf32>
    %25 = vector.shape_cast %24 : vector<1x1x128xf32> to vector<1x128xf32>
    %26 = vector.broadcast %25 : vector<1x128xf32> to vector<128x128xf32>
    %27 = arith.addf %23, %26 : vector<128x128xf32>
    %cst_21 = arith.constant 0.000000e+00 : f32
    %28 = vector.broadcast %cst_21 : f32 to vector<128x128xf32>
    %29 = arith.maximumf %27, %28 : vector<128x128xf32>
    %30 = arith.truncf %29 : vector<128x128xf32> to vector<128x128xbf16>
    %c3 = arith.constant 3 : index
    %c0_22 = arith.constant 0 : index
    %c0_23 = arith.constant 0 : index
    %31 = vector.load %arg2[%c3, %c0_22, %c0_23] : memref<6x128x128xbf16, #tpu.memory_space<vmem>>, vector<1x128x128xbf16>
    %32 = vector.shape_cast %31 : vector<1x128x128xbf16> to vector<128x128xbf16>
    %cst_24 = arith.constant dense<0.000000e+00> : vector<128x128xf32>
    %33 = tpu.matmul %30, %32, %cst_24 {dimension_numbers = #tpu.dot_dimension_numbers<[1], [0], [0], [1], [0, 0, 1, 1], [], []>} : vector<128x128xbf16>, vector<128x128xbf16>, vector<128x128xf32> -> vector<128x128xf32>
    %c3_25 = arith.constant 3 : index
    %c0_26 = arith.constant 0 : index
    %c0_27 = arith.constant 0 : index
    %34 = vector.load %arg3[%c3_25, %c0_26, %c0_27] : memref<6x1x128xf32, #tpu.memory_space<vmem>>, vector<1x1x128xf32>
    %35 = vector.shape_cast %34 : vector<1x1x128xf32> to vector<1x128xf32>
    %36 = vector.broadcast %35 : vector<1x128xf32> to vector<128x128xf32>
    %37 = arith.addf %33, %36 : vector<128x128xf32>
    %cst_28 = arith.constant 0.000000e+00 : f32
    %38 = vector.broadcast %cst_28 : f32 to vector<128x128xf32>
    %39 = arith.maximumf %37, %38 : vector<128x128xf32>
    %40 = arith.truncf %39 : vector<128x128xf32> to vector<128x128xbf16>
    %c4 = arith.constant 4 : index
    %c0_29 = arith.constant 0 : index
    %c0_30 = arith.constant 0 : index
    %41 = vector.load %arg2[%c4, %c0_29, %c0_30] : memref<6x128x128xbf16, #tpu.memory_space<vmem>>, vector<1x128x128xbf16>
    %42 = vector.shape_cast %41 : vector<1x128x128xbf16> to vector<128x128xbf16>
    %cst_31 = arith.constant dense<0.000000e+00> : vector<128x128xf32>
    %43 = tpu.matmul %40, %42, %cst_31 {dimension_numbers = #tpu.dot_dimension_numbers<[1], [0], [0], [1], [0, 0, 1, 1], [], []>} : vector<128x128xbf16>, vector<128x128xbf16>, vector<128x128xf32> -> vector<128x128xf32>
    %c4_32 = arith.constant 4 : index
    %c0_33 = arith.constant 0 : index
    %c0_34 = arith.constant 0 : index
    %44 = vector.load %arg3[%c4_32, %c0_33, %c0_34] : memref<6x1x128xf32, #tpu.memory_space<vmem>>, vector<1x1x128xf32>
    %45 = vector.shape_cast %44 : vector<1x1x128xf32> to vector<1x128xf32>
    %46 = vector.broadcast %45 : vector<1x128xf32> to vector<128x128xf32>
    %47 = arith.addf %43, %46 : vector<128x128xf32>
    %cst_35 = arith.constant 0.000000e+00 : f32
    %48 = vector.broadcast %cst_35 : f32 to vector<128x128xf32>
    %49 = arith.maximumf %47, %48 : vector<128x128xf32>
    %50 = arith.truncf %49 : vector<128x128xf32> to vector<128x128xbf16>
    %c5 = arith.constant 5 : index
    %c0_36 = arith.constant 0 : index
    %c0_37 = arith.constant 0 : index
    %51 = vector.load %arg2[%c5, %c0_36, %c0_37] : memref<6x128x128xbf16, #tpu.memory_space<vmem>>, vector<1x128x128xbf16>
    %52 = vector.shape_cast %51 : vector<1x128x128xbf16> to vector<128x128xbf16>
    %cst_38 = arith.constant dense<0.000000e+00> : vector<128x128xf32>
    %53 = tpu.matmul %50, %52, %cst_38 {dimension_numbers = #tpu.dot_dimension_numbers<[1], [0], [0], [1], [0, 0, 1, 1], [], []>} : vector<128x128xbf16>, vector<128x128xbf16>, vector<128x128xf32> -> vector<128x128xf32>
    %c5_39 = arith.constant 5 : index
    %c0_40 = arith.constant 0 : index
    %c0_41 = arith.constant 0 : index
    %54 = vector.load %arg3[%c5_39, %c0_40, %c0_41] : memref<6x1x128xf32, #tpu.memory_space<vmem>>, vector<1x1x128xf32>
    %55 = vector.shape_cast %54 : vector<1x1x128xf32> to vector<1x128xf32>
    %56 = vector.broadcast %55 : vector<1x128xf32> to vector<128x128xf32>
    %57 = arith.addf %53, %56 : vector<128x128xf32>
    %c0_42 = arith.constant 0 : index
    %c0_43 = arith.constant 0 : index
    %58 = vector.load %arg4[%c0_42, %c0_43] : memref<128x128xf32, #tpu.memory_space<vmem>>, vector<128x128xf32>
    tpu.vector_store %arg4[%c0_42, %c0_43], %57 {strides = array<i32>} : memref<128x128xf32, #tpu.memory_space<vmem>>, vector<128x128xf32>,
    return
  }
  func.func @transform_0(%arg0: i32) -> (i32, i32) {
    %c0_i32 = arith.constant 0 : i32
    %c0_i32_0 = arith.constant 0 : i32
    return %arg0, %c0_i32 : i32, i32
  }
  func.func @transform_1(%arg0: i32) -> (i32, i32, i32) {
    %c0_i32 = arith.constant 0 : i32
    %c0_i32_0 = arith.constant 0 : i32
    %c0_i32_1 = arith.constant 0 : i32
    %c0_i32_2 = arith.constant 0 : i32
    return %c0_i32, %c0_i32_0, %c0_i32_1 : i32, i32, i32
  }
  func.func @transform_2(%arg0: i32) -> (i32, i32, i32) {
    %c0_i32 = arith.constant 0 : i32
    %c0_i32_0 = arith.constant 0 : i32
    %c0_i32_1 = arith.constant 0 : i32
    %c0_i32_2 = arith.constant 0 : i32
    return %c0_i32, %c0_i32_0, %c0_i32_1 : i32, i32, i32
  }
  func.func @transform_3(%arg0: i32) -> (i32, i32) {
    %c0_i32 = arith.constant 0 : i32
    %c0_i32_0 = arith.constant 0 : i32
    return %arg0, %c0_i32 : i32, i32
  }
}

</mosaic_0001>

<bundles_post_ra>
// kernel: tpu_custom_call.1
= control target key start
LH: loop header
LB: loop body
LE: loop exit
PB: predicated region body
PF: predicated region fallthrough
CT: control target
= control target key end

     0   :  { %8 = vsyncpa [#allocation3], 0  ;;  %s2448_s0 = inlined_call_operand.hbm [shape: bf16[256,128], index: 0, kind: input, shape index: {}]   ;;  %s2449_s1 = inlined_call_operand.hbm [shape: bf16[6,128,128], index: 1, kind: input, shape index: {}]   ;;  %s2450_s2 = inlined_call_operand.hbm [shape: f32[6,1,128], index: 2, kind: input, shape index: {}]   ;;  %s2451_s3 = inlined_call_operand.hbm [shape: f32[256,128], index: 3, kind: output, shape index: {}]  }
   0x1   :  { %10 = vsyncpa [#allocation3 + $0x1], 0 }
   0x2   :  { %11 = vsyncpa [#allocation6], 0 }
   0x3   :  { %12 = vsyncpa [#allocation4], 0 }
   0x4   :  { %14 = vsyncpa [#allocation4 + $0x1], 0  ;;  %s2224_s12 = smov 0   ;;  %s2226_s13 = smov 0  }
   0x5   :  { %s2228_s14 = smov 0   ;;  %s2230_s15 = smov 0  }
   0x6 LB: > { %s2245_s16 = sadd.s32 4294967295, %s2192_s15   ;;  %s1545_s17 = sadd.s32 4294967294, %s2192_s15   ;;  %s2192_s15 = sphi %s2230_s15, %s2472_s15   ;;  %s2188_s14 = sphi %s2228_s14, %s2471_s14   ;;  %s2184_s13 = sphi %s2226_s13, %s2470_s13   ;;  %s2180_s12 = sphi %s2224_s12, %s2469_s12  }
   0x7   : > { %p40_p0 = scmp.ne.s32.totalorder %s2184_s13, %s2180_s12  ;;  %p2452_p1 = scmp.eq.s32.totalorder %s2245_s16, 0 }
   0x8   : > { %p106_p2 = scmp.eq.s32.totalorder %s2245_s16, 1  ;;  %p112_p3 = scmp.eq.s32.totalorder %s1545_s17, 1 }
   0x9   : > { %p2254_p4 = por %p2452_p1, %p40_p0  ;;  %p1546_p5 = scmp.ge.s32.totalorder %s2192_s15, 1 }
   0xa   : > { %p2259_p6 = por %p112_p3, %p40_p0  ;;  %p119_p7 = scmp.lt.s32.totalorder %s2192_s15, 3 }
   0xb   : > { %s2456_s18 = scalar_select %p2254_p4, 1, 0 }
   0xc   : > { %s2457_s19 = scalar_select %p2259_p6, 1, 0 }
   0xd   : > { %p2264_p8 = pnand %p1546_p5, %p119_p7  ;;  %s2194_s21 = smov [#allocation5]  }
   0xe   : > { %s131_s22 = sshll.u32 %s2194_s21, 4  ;;  %s2195_s24 = smov [#allocation7]   ;;  %s132_s22 = int_to_ptr.vmem [resolvable:$true] %s131_s22 }
   0xf   : > { %s2458_s20 = scalar_select %p2264_p8, 1, 0 }
  0x10   : > { %p1927_p9 = pneg %p2264_p8  ;;  %s144_s25 = sshll.u32 %s2195_s24, 4  ;;  %s145_s25 = int_to_ptr.vmem [resolvable:$true] %s144_s25 }
  0x11   : > { %s2055_s26 = scalar_lea.vmem %s132_s22, 6144  ;;  %p2063_p5 = scmp.lt.s32.totalorder %s132_s22, %s132_s22 }
  0x12   : > { %p2273_p11 = pnand %p1927_p9, %p2452_p1  ;;  %p2056_p13 = scmp.ne.s32.totalorder %s132_s22, %s2055_s26 }
  0x13   : > { %p2064_p7 = scmp.lt.s32.totalorder %s2055_s26, %s2055_s26 }
  0x14   : > { %p2046_p12 = pneg %p2273_p11 }
  0x15   : > { %p2065_p10 = por %p2064_p7, %p2063_p5 }
  0x16   : > { %p2058_p0 = pnand %p2056_p13, %p2046_p12 }
  0x18   : > { %p2059_p3 = pneg %p2058_p0 }
  0x1a   : > { %p2066_p9 = pnand %p2065_p10, %p2059_p3 }
  0x1c   : > { %2069 = shalt.err (!%p2066_p9)
}
  0x1d   : > { %s2196_s27 = smov 64   ;;  %s2197_s28 = smov 4  }
  0x1e   : > { %1930 = dma.hbm_to_vmem [thread:$0]  (!%p2273_p11), %s2449_s1, 6144, %s132_s22, [#allocation6], %s2196_s27, %s2196_s27, %s2197_s28  }
  0x1f   : > { %s2081_s4 = scalar_lea.vmem %s145_s25, 96  ;;  %p2089_p10 = scmp.lt.s32.totalorder %s145_s25, %s145_s25 }
  0x20   : > { %p2082_p13 = scmp.ne.s32.totalorder %s145_s25, %s2081_s4  ;;  %p2090_p3 = scmp.lt.s32.totalorder %s2081_s4, %s2081_s4 }
  0x22   : > { %p2084_p0 = pnand %p2082_p13, %p2046_p12  ;;  %p2091_p7 = por %p2090_p3, %p2089_p10 }
  0x24   : > { %p2085_p5 = pneg %p2084_p0 }
  0x26   : > { %p2092_p9 = pnand %p2091_p7, %p2085_p5 }
  0x28   : > { %2095 = shalt.err (!%p2092_p9)
}
  0x29   : > { %s2198_s5 = smov 16   ;;  %s2199_s6 = smov 1  }
  0x2a   : > { %1933 = dma.hbm_to_vmem [thread:$0]  (!%p2273_p11), %s2450_s2, 96, %s145_s25, [#allocation6], %s2198_s5, %s2198_s5, %s2199_s6  }
  0x2b   : > { %s2299_s9 = sadd.s32 1, %s2192_s15   ;;  %s27_s11 = sadd.s32 1, %s2188_s14 }
  0x2c   : > { %s24_s10 = ssub.s32 %s2192_s15, %s2299_s9  ;;  %p34_p13 = scmp.ne.s32.totalorder %s2188_s14, %s2184_s13 }
  0x2d   : > { %p25_p12 = scmp.eq.s32.totalorder %s24_s10, 0  ;;  %p35_p0 = scmp.eq.s32.totalorder %s2192_s15, 0 }
  0x2e   : > { %p2312_p10 = por %p106_p2, %p34_p13  ;;  %p1944_p3 = scmp.lt.s32.totalorder %s2192_s15, 2 }
  0x2f   : > { %s2308_s17 = scalar_select %p25_p12, %s2188_s14, %s27_s11  }
  0x30   : > { %p36_p5 = por %p35_p0, %p34_p13  ;;  %s158_s22 = sand.u32 1, %s2188_s14  }
  0x31   : > { %s2460_s21 = scalar_select %p2312_p10, 1, 0 }
  0x32   : > { %s1550_s23 = sshll.u32 %s158_s22, 6  ;;  %s1625_s24 = sshll.u32 %s2192_s15, 10 }
  0x33   : > { %s2322_s29 = scalar_lea.hbm %s2448_s0, %s1625_s24  ;;  %s162_s30 = scalar_lea.vmem [#allocation2], %s1550_s23 }
  0x34   : > { %s169_s4 = sshll.u32 %s162_s30, 4  ;;  %p2326_p2 = pnand %p1944_p3, %p36_p5  ;;  %s2324_s4 = int_to_ptr.vmem [resolvable:$true] %s169_s4 }
  0x35   : > { %s2330_s6 = scalar_lea.sflag [#allocation3], %s158_s22  ;;  %s2096_s7 = scalar_lea.hbm %s2322_s29, 1024 }
  0x36   : > { %p2097_p11 = scmp.ne.s32.totalorder %s2322_s29, %s2096_s7  ;;  %p2098_p7 = pneg %p2326_p2 }
  0x37   : > { %s2101_s11 = scalar_lea.hbm %s2448_s0, 2048  ;;  %p2102_p13 = scmp.lt.s32.totalorder %s2322_s29, %s2448_s0 }
  0x38   : > { %p2099_p9 = pnand %p2098_p7, %p2097_p11  ;;  %p2103_p0 = scmp.lt.s32.totalorder %s2101_s11, %s2096_s7 }
  0x3a   : > { %p2100_p12 = pneg %p2099_p9  ;;  %p2104_p5 = por %p2103_p0, %p2102_p13 }
  0x3c   : > { %p2105_p3 = pnand %p2104_p5, %p2100_p12 }
  0x3e   : > { %2108 = shalt.err (!%p2105_p3)
}
  0x3f   : > { %s2109_s22 = scalar_lea.vmem %s2324_s4, 1024  ;;  %s2200_s25 = smov [#allocation2]  }
  0x40   : > { %p2110_p1 = scmp.ne.s32.totalorder %s2324_s4, %s2109_s22  ;;  %s2114_s26 = sshll.u32 %s2200_s25, 4  ;;  %s2115_s26 = int_to_ptr.vmem [resolvable:$false] %s2114_s26 }
  0x41   : > { %s2116_s30 = scalar_lea.vmem %s2115_s26, 2048  ;;  %p2117_p9 = scmp.lt.s32.totalorder %s2324_s4, %s2115_s26 }
  0x42   : > { %p2112_p6 = pnand %p2110_p1, %p2098_p7  ;;  %p2118_p10 = scmp.lt.s32.totalorder %s2116_s30, %s2109_s22 }
  0x44   : > { %p2113_p11 = pneg %p2112_p6  ;;  %p2119_p4 = por %p2118_p10, %p2117_p9 }
  0x46   : > { %p2120_p8 = pnand %p2119_p4, %p2113_p11 }
  0x48   : > { %2123 = shalt.err (!%p2120_p8)
}
  0x49   : > { %1937 = dma.hbm_to_vmem [thread:$0]  (!%p2326_p2), %s2322_s29, 1024, %s2324_s4, %s2330_s6, %s2196_s27, %s2196_s27, %s2197_s28  }
  0x4a   : > { %p2462_p1 = scmp.ne.s32.totalorder %s2458_s20, 0 }
  0x4b   : > { %s2357_s7 = sand.u32 (!%p2462_p1), 1, %s2184_s13   ;;  %p2463_p4 = scmp.ne.s32.totalorder (!%p2462_p1), %s2456_s18, 0 }
  0x4c   : > { %181 = sbr.rel (%p2462_p1) target bundleno = 1387 (0x56b), region = 32  ;;  %s1554_s8 = sshll.u32 (!%p2462_p1), %s2357_s7, 6 }
  0x4d   : > { %s184_s10 = scalar_lea.sflag (!%p2462_p1), [#allocation3], %s2357_s7  ;;  %s2361_s11 = scalar_lea.vmem (!%p2462_p1), [#allocation2], %s1554_s8 }
  0x51   : > { %2167 = dma.done.wait (%p2463_p4), %s184_s10, 1024  }
  0x52   : > { %2169 = vsyncadd (%p2463_p4), %s184_s10, 4294966272  ;;  %p2464_p6 = scmp.eq.s32.totalorder %s2245_s16, 0 }
  0x54   : > { %2171 = dma.done.wait (%p2464_p6), [#allocation6], 6240   ;;  %p2465_p8 = pmov %p2464_p6 }
  0x55   : > { %v1988_v0 = vld [vmem:[#allocation5 + $0x38] sm:$0xff]   ;;  %v1989_v1 = vld [vmem:[#allocation5 + $0x30] sm:$0xff]   ;;  %v1990_v2 = vld [vmem:[#allocation5 + $0x28] sm:$0xff]   ;;  %s1557_s18 = sshll.u32 %s2357_s7, 7  ;;  %s1626_s27 = sshll.u32 %s2245_s16, 11 }
  0x56   : > { %2173 = vsyncadd (%p2465_p8), [#allocation6], 4294961056  ;;  %1723 = vmatprep.subr.bf16.mxu0 %v1988_v0  ;;  %v1991_v3 = vld [vmem:[#allocation5 + $0x20] sm:$0xff]   ;;  %v1992_v5 = vld [vmem:[#allocation5 + $0x18] sm:$0xff]   ;;  %s2380_s20 = scalar_lea.vmem [#allocation8], %s1557_s18  ;;  %s2401_s5 = scalar_lea.hbm %s2451_s3, %s1626_s27 }
  0x57   : > { %1724 = vmatpush3.bf16.msra.mxu0 %v1988_v0  ;;  %v1996_v4 = vld [vmem:[%s2361_s11] sm:$0xff]   ;;  %v1993_v6 = vld [vmem:[#allocation5 + $0x10] sm:$0xff]   ;;  %v2004_v7 = vld [vmem:[#allocation5 + $0x78] sm:$0xff]   ;;  %s1453_s28 = sshll.u32 %s2380_s20, 4  ;;  %s1440_s6 = scalar_lea.sflag [#allocation4], %s2357_s7  ;;  %s2403_s28 = int_to_ptr.vmem [resolvable:$true] %s1453_s28 }
  0x58   : > { %1725 = vmatprep.subr.bf16.mxu0 %v1989_v1  ;;  %1739 = vmatprep.mubr.bf16.mxu0 %v1996_v4  ;;  %v2005_v8 = vld [vmem:[#allocation5 + $0x70] sm:$0xff]   ;;  %v1994_v9 = vld [vmem:[#allocation5 + $0x8] sm:$0xff]   ;;  %v1995_v11 = vld [vmem:[#allocation5] sm:$0xff]   ;;  %s2124_s16 = scalar_lea.vmem %s2403_s28, 2048  ;;  %p2466_p2 = scmp.ne.s32.totalorder %s2460_s21, 0 }
  0x59   : > { %1755 = vmatprep.subr.bf16.mxu1 %v2004_v7  ;;  %v2006_v10 = vld [vmem:[#allocation5 + $0x68] sm:$0xff]   ;;  %v2007_v12 = vld [vmem:[#allocation5 + $0x60] sm:$0xff]   ;;  %v2008_v13 = vld [vmem:[#allocation5 + $0x58] sm:$0xff]   ;;  %p2125_p10 = scmp.ne.s32.totalorder %s2403_s28, %s2124_s16  ;;  %s2201_s23 = smov [#allocation8]  }
  0x5a   : > { %1756 = vmatpush3.bf16.msra.mxu1 %v2004_v7  ;;  %v1997_v14 = vld [vmem:[%s2361_s11 + $0x8] sm:$0xff]   ;;  %v1998_v15 = vld [vmem:[%s2361_s11 + $0x10] sm:$0xff]   ;;  %v1999_v16 = vld [vmem:[%s2361_s11 + $0x18] sm:$0xff]   ;;  %s2128_s24 = sshll.u32 %s2201_s23, 4  ;;  %s2129_s24 = int_to_ptr.vmem [resolvable:$false] %s2128_s24 }
  0x5b   : > { %1726 = vmatpush3.bf16.msra.mxu0 %v1989_v1  ;;  %1757 = vmatprep.subr.bf16.mxu1 %v2005_v8  ;;  %v2000_v17 = vld [vmem:[%s2361_s11 + $0x20] sm:$0xff]   ;;  %v2001_v18 = vld [vmem:[%s2361_s11 + $0x28] sm:$0xff]   ;;  %v2002_v19 = vld [vmem:[%s2361_s11 + $0x30] sm:$0xff]   ;;  %p2126_p7 = pnand %p2125_p10, %p2466_p2  ;;  %s2130_s22 = scalar_lea.vmem %s2129_s24, 4096 }
  0x5c   : > { %1727 = vmatprep.subr.bf16.mxu0 %v1990_v2  ;;  %v2003_v20 = vld [vmem:[%s2361_s11 + $0x38] sm:$0xff]   ;;  %v2009_v21 = vld [vmem:[#allocation5 + $0x50] sm:$0xff]   ;;  %v2010_v22 = vld [vmem:[#allocation5 + $0x48] sm:$0xff]   ;;  %p2131_p13 = scmp.lt.s32.totalorder %s2403_s28, %s2129_s24  ;;  %p2132_p0 = scmp.lt.s32.totalorder %s2130_s22, %s2124_s16 }
  0x5d   : > { %v2011_v23 = vld [vmem:[#allocation5 + $0x40] sm:$0xff]   ;;  %v2012_v24 = vld [vmem:[#allocation5 + $0xb8] sm:$0xff]   ;;  %v2013_v25 = vld [vmem:[#allocation5 + $0xb0] sm:$0xff]   ;;  %p2127_p12 = pneg %p2126_p7 }
  0x5e   : > { %1758 = vmatpush3.bf16.msra.mxu1 %v2005_v8  ;;  %v2014_v26 = vld [vmem:[#allocation5 + $0xa8] sm:$0xff]   ;;  %v2015_v27 = vld [vmem:[#allocation5 + $0xa0] sm:$0xff]   ;;  %v2016_v28 = vld [vmem:[#allocation5 + $0x98] sm:$0xff]   ;;  %p2133_p5 = por %p2132_p0, %p2131_p13 }
  0x5f   : > { %1728 = vmatpush3.bf16.msra.mxu0 %v1990_v2  ;;  %1759 = vmatprep.subr.bf16.mxu1 %v2006_v10  ;;  %v1558_v31 = vld [vmem:[#allocation7] ss:$0 sm:$0xff] }
  0x60   : > { %1729 = vmatprep.subr.bf16.mxu0 %v1991_v3  ;;  %p2134_p3 = pnand %p2133_p5, %p2127_p12 }
  0x62   : > { %1760 = vmatpush3.bf16.msra.mxu1 %v2006_v10 }
  0x63   : > { %1730 = vmatpush3.bf16.msra.mxu0 %v1991_v3  ;;  %1761 = vmatprep.subr.bf16.mxu1 %v2007_v12 }
  0x64   : > { %1731 = vmatprep.subr.bf16.mxu0 %v1992_v5 }
  0x66   : > { %1762 = vmatpush3.bf16.msra.mxu1 %v2007_v12 }
  0x67   : > { %1732 = vmatpush3.bf16.msra.mxu0 %v1992_v5  ;;  %1763 = vmatprep.subr.bf16.mxu1 %v2008_v13 }
  0x68   : > { %1733 = vmatprep.subr.bf16.mxu0 %v1993_v6 }
  0x6a   : > { %1764 = vmatpush3.bf16.msra.mxu1 %v2008_v13 }
  0x6b   : > { %1734 = vmatpush3.bf16.msra.mxu0 %v1993_v6  ;;  %1765 = vmatprep.subr.bf16.mxu1 %v2009_v21 }
  0x6c   : > { %1735 = vmatprep.subr.bf16.mxu0 %v1994_v9 }
  0x6e   : > { %1766 = vmatpush3.bf16.msra.mxu1 %v2009_v21 }
  0x6f   : > { %1736 = vmatpush3.bf16.msra.mxu0 %v1994_v9  ;;  %1767 = vmatprep.subr.bf16.mxu1 %v2010_v22 }
  0x70   : > { %1737 = vmatprep.subr.bf16.mxu0 %v1995_v11 }
  0x72   : > { %1768 = vmatpush3.bf16.msra.mxu1 %v2010_v22  ;;  %v2017_v22 = vld [vmem:[#allocation5 + $0x90] sm:$0xff]  }
  0x73   : > { %1738 = vmatpush3.bf16.msra.mxu0 %v1995_v11  ;;  %1769 = vmatprep.subr.bf16.mxu1 %v2011_v23 }
  0x74   : > { %1787 = vmatprep.subr.bf16.mxu0 %v2012_v24 }
  0x76   : > { %1740 = vmatmul.mubr.bf16.vlgmr.msra.gmra.mxu0 %v1997_v14  ;;  %1770 = vmatpush3.bf16.msra.mxu1 %v2011_v23  ;;  %v2018_v23 = vld [vmem:[#allocation5 + $0x88] sm:$0xff]  }
  0x77   : > { %1743 = vmatprep.mubr.bf16.mxu0 %v1998_v15  ;;  %1788 = vmatpush3.bf16.msra.mxu0 %v2012_v24  ;;  %v2019_v24 = vld [vmem:[#allocation5 + $0x80] sm:$0xff]  }
  0x78   : > { %1789 = vmatprep.subr.bf16.mxu0 %v2013_v25 }
  0x7b   : > { %1790 = vmatpush3.bf16.msra.mxu0 %v2013_v25  ;;  %v2020_v25 = vld [vmem:[#allocation5 + $0xf8] sm:$0xff]  }
  0x7c   : > { %1791 = vmatprep.subr.bf16.mxu0 %v2014_v26  ;;  %1819 = vmatprep.subr.bf16.mxu1 %v2020_v25 }
  0x7e   : > { %1744 = vmatmul.mubr.bf16.gmra.mxu0 %v1999_v16 }
  0x7f   : > { %1747 = vmatprep.mubr.bf16.mxu0 %v2000_v17  ;;  %1792 = vmatpush3.bf16.msra.mxu0 %v2014_v26  ;;  %v2021_v26 = vld [vmem:[#allocation5 + $0xf0] sm:$0xff]  }
  0x80   : > { %1793 = vmatprep.subr.bf16.mxu0 %v2015_v27 }
  0x83   : > { %1794 = vmatpush3.bf16.msra.mxu0 %v2015_v27  ;;  %v2022_v27 = vld [vmem:[#allocation5 + $0xe8] sm:$0xff]  }
  0x84   : > { %1795 = vmatprep.subr.bf16.mxu0 %v2016_v28 }
  0x86   : > { %1748 = vmatmul.mubr.bf16.gmra.mxu0 %v2001_v18 }
  0x87   : > { %1751 = vmatprep.mubr.bf16.mxu0 %v2002_v19  ;;  %1796 = vmatpush3.bf16.msra.mxu0 %v2016_v28  ;;  %v2023_v28 = vld [vmem:[#allocation5 + $0xe0] sm:$0xff]  }
  0x88   : > { %1797 = vmatprep.subr.bf16.mxu0 %v2017_v22 }
  0x8b   : > { %1798 = vmatpush3.bf16.msra.mxu0 %v2017_v22 }
  0x8c   : > { %1799 = vmatprep.subr.bf16.mxu0 %v2018_v23 }
  0x8e   : > { %1752 = vmatmul.mubr.bf16.gmra.mxu0 %v2003_v20 }
  0x8f   : > { %1800 = vmatpush3.bf16.msra.mxu0 %v2018_v23  ;;  %v2025_v23 = vld [vmem:[#allocation5 + $0xd0] sm:$0xff]  }
  0x90   : > { %1801 = vmatprep.subr.bf16.mxu0 %v2019_v24 }
  0x93   : > { %1802 = vmatpush3.bf16.msra.mxu0 %v2019_v24  ;;  %v2026_v24 = vld [vmem:[#allocation5 + $0xc8] sm:$0xff]  }
 0x136   : > { %v1741_v29 = vpop.f32.mrf.mxu0 }
 0x137   : > { %v399_v35 = vadd.f32 %v1741_v29, %v1558_v31  ;;  %v2024_v29 = vld [vmem:[#allocation5 + $0xd8] sm:$0xff]  }
 0x138   : > { %v390_v30 = vpop.f32.mrf.mxu0 }
 0x139   : > { %v391_v33 = vadd.f32 %v1558_v31, %v390_v30  ;;  %v455_v42 = vmax.f32 %v399_v35, 0.0 }
 0x13a   : > { %v1742_v32 = vpop.f32.mrf.mxu0 }
 0x13b   : > { %v402_v34 = vadd.f32 %v1742_v32, %v1558_v31  ;;  %v453_v40 = vmax.f32 %v391_v33, 0.0  ;;  %v1575_v32 = vld [vmem:[#allocation7 + $0x1] ss:$0 sm:$0xff] }
 0x13c   : > { %v393_v36 = vpop.f32.mrf.mxu0 }
 0x13d   : > { %v394_v37 = vadd.f32 %v1558_v31, %v393_v36  ;;  %v456_v38 = vmax.f32 %v402_v34, 0.0 }
 0x13e   : > { %v1745_v39 = vpop.f32.mrf.mxu0 }
 0x13f   : > { %v454_v41 = vmax.f32 %v394_v37, 0.0  ;;  %v470_v45 = vpack.c.bf16 %v456_v38, %v455_v42  ;;  %v415_v49 = vadd.f32 %v1745_v39, %v1558_v31 }
 0x140   : > { %v406_v43 = vpop.f32.mrf.mxu0 }
 0x141   : > { %v469_v44 = vpack.c.bf16 %v454_v41, %v453_v40  ;;  %v407_v47 = vadd.f32 %v1558_v31, %v406_v43  ;;  %v459_v56 = vmax.f32 %v415_v49, 0.0 }
 0x142   : > { %v1746_v46 = vpop.f32.mrf.mxu0 }
 0x143   : > { %v418_v48 = vadd.f32 %v1746_v46, %v1558_v31  ;;  %1771 = vmatprep.mubr.bf16.mxu1 %v469_v44  ;;  %v457_v54 = vmax.f32 %v407_v47, 0.0 }
 0x144   : > { %v409_v50 = vpop.f32.mrf.mxu0  ;;  %1772 = vmatmul.mubr.bf16.vlgmr.msra.gmra.mxu1 %v470_v45 }
 0x145   : > { %v410_v51 = vadd.f32 %v1558_v31, %v409_v50  ;;  %v460_v52 = vmax.f32 %v418_v48, 0.0  ;;  %1820 = vmatpush3.bf16.msra.mxu1 %v2020_v25  ;;  %v2027_v25 = vld [vmem:[#allocation5 + $0xc0] sm:$0xff]  }
 0x146   : > { %v1749_v53 = vpop.f32.mrf.mxu0  ;;  %1821 = vmatprep.subr.bf16.mxu1 %v2021_v26 }
 0x147   : > { %v458_v55 = vmax.f32 %v410_v51, 0.0  ;;  %v472_v59 = vpack.c.bf16 %v460_v52, %v459_v56  ;;  %v431_v63 = vadd.f32 %v1749_v53, %v1558_v31 }
 0x148   : > { %v422_v57 = vpop.f32.mrf.mxu0 }
 0x149   : > { %v471_v58 = vpack.c.bf16 %v458_v55, %v457_v54  ;;  %v423_v61 = vadd.f32 %v1558_v31, %v422_v57  ;;  %v463_v6 = vmax.f32 %v431_v63, 0.0  ;;  %1822 = vmatpush3.bf16.msra.mxu1 %v2021_v26  ;;  %v2028_v26 = vld [vmem:[#allocation5 + $0x138] sm:$0xff]  }
 0x14a   : > { %v1750_v60 = vpop.f32.mrf.mxu0  ;;  %1823 = vmatprep.subr.bf16.mxu1 %v2022_v27  ;;  %1851 = vmatprep.subr.bf16.mxu0 %v2028_v26 }
 0x14b   : > { %v434_v62 = vadd.f32 %v1750_v60, %v1558_v31  ;;  %1775 = vmatprep.mubr.bf16.mxu1 %v471_v58  ;;  %v461_v4 = vmax.f32 %v423_v61, 0.0 }
 0x14c   : > { %v425_v0 = vpop.f32.mrf.mxu0  ;;  %1776 = vmatmul.mubr.bf16.gmra.mxu1 %v472_v59 }
 0x14d   : > { %v426_v1 = vadd.f32 %v1558_v31, %v425_v0  ;;  %v464_v2 = vmax.f32 %v434_v62, 0.0  ;;  %1824 = vmatpush3.bf16.msra.mxu1 %v2022_v27  ;;  %v2029_v27 = vld [vmem:[#allocation5 + $0x130] sm:$0xff]  }
 0x14e   : > { %v1753_v3 = vpop.f32.mrf.mxu0  ;;  %1825 = vmatprep.subr.bf16.mxu1 %v2023_v28 }
 0x14f   : > { %v462_v5 = vmax.f32 %v426_v1, 0.0  ;;  %v474_v9 = vpack.c.bf16 %v464_v2, %v463_v6  ;;  %v447_v13 = vadd.f32 %v1753_v3, %v1558_v31 }
 0x150   : > { %v438_v7 = vpop.f32.mrf.mxu0 }
 0x151   : > { %v473_v8 = vpack.c.bf16 %v462_v5, %v461_v4  ;;  %v439_v11 = vadd.f32 %v1558_v31, %v438_v7  ;;  %v467_v19 = vmax.f32 %v447_v13, 0.0  ;;  %1826 = vmatpush3.bf16.msra.mxu1 %v2023_v28  ;;  %v2030_v28 = vld [vmem:[#allocation5 + $0x128] sm:$0xff]  }
 0x152   : > { %v1754_v10 = vpop.f32.mrf.mxu0  ;;  %1827 = vmatprep.subr.bf16.mxu1 %v2024_v29 }
 0x153   : > { %v450_v12 = vadd.f32 %v1754_v10, %v1558_v31  ;;  %1779 = vmatprep.mubr.bf16.mxu1 %v473_v8  ;;  %v465_v17 = vmax.f32 %v439_v11, 0.0 }
 0x154   : > { %v441_v14 = vpop.f32.mrf.mxu0  ;;  %1780 = vmatmul.mubr.bf16.gmra.mxu1 %v474_v9 }
 0x155   : > { %v442_v15 = vadd.f32 %v1558_v31, %v441_v14  ;;  %v468_v16 = vmax.f32 %v450_v12, 0.0  ;;  %1828 = vmatpush3.bf16.msra.mxu1 %v2024_v29  ;;  %v2031_v29 = vld [vmem:[#allocation5 + $0x120] sm:$0xff]  }
 0x156   : > { %1829 = vmatprep.subr.bf16.mxu1 %v2025_v23 }
 0x157   : > { %v466_v18 = vmax.f32 %v442_v15, 0.0  ;;  %v476_v21 = vpack.c.bf16 %v468_v16, %v467_v19 }
 0x159   : > { %v475_v20 = vpack.c.bf16 %v466_v18, %v465_v17  ;;  %1830 = vmatpush3.bf16.msra.mxu1 %v2025_v23 }
 0x15a   : > { %1831 = vmatprep.subr.bf16.mxu1 %v2026_v24 }
 0x15b   : > { %1783 = vmatprep.mubr.bf16.mxu1 %v475_v20 }
 0x15c   : > { %1784 = vmatmul.mubr.bf16.gmra.mxu1 %v476_v21 }
 0x15d   : > { %1832 = vmatpush3.bf16.msra.mxu1 %v2026_v24  ;;  %v2033_v24 = vld [vmem:[#allocation5 + $0x110] sm:$0xff]  }
 0x15e   : > { %1833 = vmatprep.subr.bf16.mxu1 %v2027_v25 }
 0x161   : > { %1834 = vmatpush3.bf16.msra.mxu1 %v2027_v25  ;;  %v2034_v25 = vld [vmem:[#allocation5 + $0x108] sm:$0xff]  }
 0x204   : > { %v1773_v30 = vpop.f32.mrf.mxu1 }
 0x205   : > { %v593_v36 = vadd.f32 %v1773_v30, %v1575_v32  ;;  %v2032_v30 = vld [vmem:[#allocation5 + $0x118] sm:$0xff]  }
 0x206   : > { %v584_v31 = vpop.f32.mrf.mxu1 }
 0x207   : > { %v585_v34 = vadd.f32 %v1575_v32, %v584_v31  ;;  %v649_v43 = vmax.f32 %v593_v36, 0.0 }
 0x208   : > { %v1774_v33 = vpop.f32.mrf.mxu1 }
 0x209   : > { %v596_v35 = vadd.f32 %v1774_v33, %v1575_v32  ;;  %v647_v41 = vmax.f32 %v585_v34, 0.0  ;;  %v1584_v33 = vld [vmem:[#allocation7 + $0x2] ss:$0 sm:$0xff] }
 0x20a   : > { %v587_v37 = vpop.f32.mrf.mxu1 }
 0x20b   : > { %v588_v38 = vadd.f32 %v1575_v32, %v587_v37  ;;  %v650_v39 = vmax.f32 %v596_v35, 0.0 }
 0x20c   : > { %v1777_v40 = vpop.f32.mrf.mxu1 }
 0x20d   : > { %v648_v42 = vmax.f32 %v588_v38, 0.0  ;;  %v664_v46 = vpack.c.bf16 %v650_v39, %v649_v43  ;;  %v609_v50 = vadd.f32 %v1777_v40, %v1575_v32 }
 0x20e   : > { %v600_v44 = vpop.f32.mrf.mxu1 }
 0x20f   : > { %v663_v45 = vpack.c.bf16 %v648_v42, %v647_v41  ;;  %v601_v48 = vadd.f32 %v1575_v32, %v600_v44  ;;  %v653_v57 = vmax.f32 %v609_v50, 0.0 }
 0x210   : > { %v1778_v47 = vpop.f32.mrf.mxu1 }
 0x211   : > { %v612_v49 = vadd.f32 %v1778_v47, %v1575_v32  ;;  %1803 = vmatprep.mubr.bf16.mxu0 %v663_v45  ;;  %v651_v55 = vmax.f32 %v601_v48, 0.0 }
 0x212   : > { %v603_v51 = vpop.f32.mrf.mxu1  ;;  %1804 = vmatmul.mubr.bf16.vlgmr.msra.gmra.mxu0 %v664_v46 }
 0x213   : > { %v604_v52 = vadd.f32 %v1575_v32, %v603_v51  ;;  %v654_v53 = vmax.f32 %v612_v49, 0.0  ;;  %1852 = vmatpush3.bf16.msra.mxu0 %v2028_v26  ;;  %v2035_v26 = vld [vmem:[#allocation5 + $0x100] sm:$0xff]  }
 0x214   : > { %v1781_v54 = vpop.f32.mrf.mxu1  ;;  %1853 = vmatprep.subr.bf16.mxu0 %v2029_v27 }
 0x215   : > { %v652_v56 = vmax.f32 %v604_v52, 0.0  ;;  %v666_v60 = vpack.c.bf16 %v654_v53, %v653_v57  ;;  %v625_v0 = vadd.f32 %v1781_v54, %v1575_v32 }
 0x216   : > { %v616_v58 = vpop.f32.mrf.mxu1 }
 0x217   : > { %v665_v59 = vpack.c.bf16 %v652_v56, %v651_v55  ;;  %v617_v62 = vadd.f32 %v1575_v32, %v616_v58  ;;  %v657_v7 = vmax.f32 %v625_v0, 0.0  ;;  %1854 = vmatpush3.bf16.msra.mxu0 %v2029_v27  ;;  %v2036_v27 = vld [vmem:[#allocation5 + $0x178] sm:$0xff]  }
 0x218   : > { %v1782_v61 = vpop.f32.mrf.mxu1  ;;  %1855 = vmatprep.subr.bf16.mxu0 %v2030_v28  ;;  %1883 = vmatprep.subr.bf16.mxu1 %v2036_v27 }
 0x219   : > { %v628_v63 = vadd.f32 %v1782_v61, %v1575_v32  ;;  %1807 = vmatprep.mubr.bf16.mxu0 %v665_v59  ;;  %v655_v5 = vmax.f32 %v617_v62, 0.0 }
 0x21a   : > { %v619_v1 = vpop.f32.mrf.mxu1  ;;  %1808 = vmatmul.mubr.bf16.gmra.mxu0 %v666_v60 }
 0x21b   : > { %v620_v2 = vadd.f32 %v1575_v32, %v619_v1  ;;  %v658_v3 = vmax.f32 %v628_v63, 0.0  ;;  %1856 = vmatpush3.bf16.msra.mxu0 %v2030_v28  ;;  %v2037_v28 = vld [vmem:[#allocation5 + $0x170] sm:$0xff]  }
 0x21c   : > { %v1785_v4 = vpop.f32.mrf.mxu1  ;;  %1857 = vmatprep.subr.bf16.mxu0 %v2031_v29 }
 0x21d   : > { %v656_v6 = vmax.f32 %v620_v2, 0.0  ;;  %v668_v10 = vpack.c.bf16 %v658_v3, %v657_v7  ;;  %v641_v14 = vadd.f32 %v1785_v4, %v1575_v32 }
 0x21e   : > { %v632_v8 = vpop.f32.mrf.mxu1 }
 0x21f   : > { %v667_v9 = vpack.c.bf16 %v656_v6, %v655_v5  ;;  %v633_v12 = vadd.f32 %v1575_v32, %v632_v8  ;;  %v661_v20 = vmax.f32 %v641_v14, 0.0  ;;  %1858 = vmatpush3.bf16.msra.mxu0 %v2031_v29  ;;  %v2038_v29 = vld [vmem:[#allocation5 + $0x168] sm:$0xff]  }
 0x220   : > { %v1786_v11 = vpop.f32.mrf.mxu1  ;;  %1859 = vmatprep.subr.bf16.mxu0 %v2032_v30 }
 0x221   : > { %v644_v13 = vadd.f32 %v1786_v11, %v1575_v32  ;;  %1811 = vmatprep.mubr.bf16.mxu0 %v667_v9  ;;  %v659_v18 = vmax.f32 %v633_v12, 0.0 }
 0x222   : > { %v635_v15 = vpop.f32.mrf.mxu1  ;;  %1812 = vmatmul.mubr.bf16.gmra.mxu0 %v668_v10 }
 0x223   : > { %v636_v16 = vadd.f32 %v1575_v32, %v635_v15  ;;  %v662_v17 = vmax.f32 %v644_v13, 0.0  ;;  %1860 = vmatpush3.bf16.msra.mxu0 %v2032_v30  ;;  %v2039_v30 = vld [vmem:[#allocation5 + $0x160] sm:$0xff]  }
 0x224   : > { %1861 = vmatprep.subr.bf16.mxu0 %v2033_v24 }
 0x225   : > { %v660_v19 = vmax.f32 %v636_v16, 0.0  ;;  %v670_v22 = vpack.c.bf16 %v662_v17, %v661_v20 }
 0x227   : > { %v669_v21 = vpack.c.bf16 %v660_v19, %v659_v18  ;;  %1862 = vmatpush3.bf16.msra.mxu0 %v2033_v24 }
 0x228   : > { %1863 = vmatprep.subr.bf16.mxu0 %v2034_v25 }
 0x229   : > { %1815 = vmatprep.mubr.bf16.mxu0 %v669_v21 }
 0x22a   : > { %1816 = vmatmul.mubr.bf16.gmra.mxu0 %v670_v22 }
 0x22b   : > { %1864 = vmatpush3.bf16.msra.mxu0 %v2034_v25  ;;  %v2041_v25 = vld [vmem:[#allocation5 + $0x150] sm:$0xff]  }
 0x22c   : > { %1865 = vmatprep.subr.bf16.mxu0 %v2035_v26 }
 0x22f   : > { %1866 = vmatpush3.bf16.msra.mxu0 %v2035_v26  ;;  %v2042_v26 = vld [vmem:[#allocation5 + $0x148] sm:$0xff]  }
 0x2d2   : > { %v1805_v31 = vpop.f32.mrf.mxu0 }
 0x2d3   : > { %v787_v37 = vadd.f32 %v1805_v31, %v1584_v33  ;;  %v2040_v31 = vld [vmem:[#allocation5 + $0x158] sm:$0xff]  }
 0x2d4   : > { %v778_v32 = vpop.f32.mrf.mxu0 }
 0x2d5   : > { %v779_v35 = vadd.f32 %v1584_v33, %v778_v32  ;;  %v843_v44 = vmax.f32 %v787_v37, 0.0 }
 0x2d6   : > { %v1806_v34 = vpop.f32.mrf.mxu0 }
 0x2d7   : > { %v790_v36 = vadd.f32 %v1806_v34, %v1584_v33  ;;  %v841_v42 = vmax.f32 %v779_v35, 0.0  ;;  %v1593_v34 = vld [vmem:[#allocation7 + $0x3] ss:$0 sm:$0xff] }
 0x2d8   : > { %v781_v38 = vpop.f32.mrf.mxu0 }
 0x2d9   : > { %v782_v39 = vadd.f32 %v1584_v33, %v781_v38  ;;  %v844_v40 = vmax.f32 %v790_v36, 0.0 }
 0x2da   : > { %v1809_v41 = vpop.f32.mrf.mxu0 }
 0x2db   : > { %v842_v43 = vmax.f32 %v782_v39, 0.0  ;;  %v858_v47 = vpack.c.bf16 %v844_v40, %v843_v44  ;;  %v803_v51 = vadd.f32 %v1809_v41, %v1584_v33 }
 0x2dc   : > { %v794_v45 = vpop.f32.mrf.mxu0 }
 0x2dd   : > { %v857_v46 = vpack.c.bf16 %v842_v43, %v841_v42  ;;  %v795_v49 = vadd.f32 %v1584_v33, %v794_v45  ;;  %v847_v58 = vmax.f32 %v803_v51, 0.0 }
 0x2de   : > { %v1810_v48 = vpop.f32.mrf.mxu0 }
 0x2df   : > { %v806_v50 = vadd.f32 %v1810_v48, %v1584_v33  ;;  %1835 = vmatprep.mubr.bf16.mxu1 %v857_v46  ;;  %v845_v56 = vmax.f32 %v795_v49, 0.0 }
 0x2e0   : > { %v797_v52 = vpop.f32.mrf.mxu0  ;;  %1836 = vmatmul.mubr.bf16.vlgmr.msra.gmra.mxu1 %v858_v47 }
 0x2e1   : > { %v798_v53 = vadd.f32 %v1584_v33, %v797_v52  ;;  %v848_v54 = vmax.f32 %v806_v50, 0.0  ;;  %1884 = vmatpush3.bf16.msra.mxu1 %v2036_v27  ;;  %v2043_v27 = vld [vmem:[#allocation5 + $0x140] sm:$0xff]  }
 0x2e2   : > { %v1813_v55 = vpop.f32.mrf.mxu0  ;;  %1885 = vmatprep.subr.bf16.mxu1 %v2037_v28 }
 0x2e3   : > { %v846_v57 = vmax.f32 %v798_v53, 0.0  ;;  %v860_v61 = vpack.c.bf16 %v848_v54, %v847_v58  ;;  %v819_v1 = vadd.f32 %v1813_v55, %v1584_v33 }
 0x2e4   : > { %v810_v59 = vpop.f32.mrf.mxu0 }
 0x2e5   : > { %v859_v60 = vpack.c.bf16 %v846_v57, %v845_v56  ;;  %v811_v63 = vadd.f32 %v1584_v33, %v810_v59  ;;  %v851_v8 = vmax.f32 %v819_v1, 0.0  ;;  %1886 = vmatpush3.bf16.msra.mxu1 %v2037_v28 }
 0x2e6   : > { %v1814_v62 = vpop.f32.mrf.mxu0  ;;  %1887 = vmatprep.subr.bf16.mxu1 %v2038_v29 }
 0x2e7   : > { %v822_v0 = vadd.f32 %v1814_v62, %v1584_v33  ;;  %1839 = vmatprep.mubr.bf16.mxu1 %v859_v60  ;;  %v849_v6 = vmax.f32 %v811_v63, 0.0 }
 0x2e8   : > { %v813_v2 = vpop.f32.mrf.mxu0  ;;  %1840 = vmatmul.mubr.bf16.gmra.mxu1 %v860_v61 }
 0x2e9   : > { %v814_v3 = vadd.f32 %v1584_v33, %v813_v2  ;;  %v852_v4 = vmax.f32 %v822_v0, 0.0  ;;  %1888 = vmatpush3.bf16.msra.mxu1 %v2038_v29 }
 0x2ea   : > { %v1817_v5 = vpop.f32.mrf.mxu0  ;;  %1889 = vmatprep.subr.bf16.mxu1 %v2039_v30 }
 0x2eb   : > { %v850_v7 = vmax.f32 %v814_v3, 0.0  ;;  %v862_v11 = vpack.c.bf16 %v852_v4, %v851_v8  ;;  %v835_v15 = vadd.f32 %v1817_v5, %v1584_v33 }
 0x2ec   : > { %v826_v9 = vpop.f32.mrf.mxu0 }
 0x2ed   : > { %v861_v10 = vpack.c.bf16 %v850_v7, %v849_v6  ;;  %v827_v13 = vadd.f32 %v1584_v33, %v826_v9  ;;  %v855_v21 = vmax.f32 %v835_v15, 0.0  ;;  %1890 = vmatpush3.bf16.msra.mxu1 %v2039_v30  ;;  %v1602_v30 = vld [vmem:[#allocation7 + $0x4] ss:$0 sm:$0xff] }
 0x2ee   : > { %v1818_v12 = vpop.f32.mrf.mxu0  ;;  %1891 = vmatprep.subr.bf16.mxu1 %v2040_v31 }
 0x2ef   : > { %v838_v14 = vadd.f32 %v1818_v12, %v1584_v33  ;;  %1843 = vmatprep.mubr.bf16.mxu1 %v861_v10  ;;  %v853_v19 = vmax.f32 %v827_v13, 0.0 }
 0x2f0   : > { %v829_v16 = vpop.f32.mrf.mxu0  ;;  %1844 = vmatmul.mubr.bf16.gmra.mxu1 %v862_v11 }
 0x2f1   : > { %v830_v17 = vadd.f32 %v1584_v33, %v829_v16  ;;  %v856_v18 = vmax.f32 %v838_v14, 0.0  ;;  %1892 = vmatpush3.bf16.msra.mxu1 %v2040_v31 }
 0x2f2   : > { %1893 = vmatprep.subr.bf16.mxu1 %v2041_v25 }
 0x2f3   : > { %v854_v20 = vmax.f32 %v830_v17, 0.0  ;;  %v864_v23 = vpack.c.bf16 %v856_v18, %v855_v21 }
 0x2f5   : > { %v863_v22 = vpack.c.bf16 %v854_v20, %v853_v19  ;;  %1894 = vmatpush3.bf16.msra.mxu1 %v2041_v25 }
 0x2f6   : > { %1895 = vmatprep.subr.bf16.mxu1 %v2042_v26 }
 0x2f7   : > { %1847 = vmatprep.mubr.bf16.mxu1 %v863_v22 }
 0x2f8   : > { %1848 = vmatmul.mubr.bf16.gmra.mxu1 %v864_v23 }
 0x2f9   : > { %1896 = vmatpush3.bf16.msra.mxu1 %v2042_v26 }
 0x2fa   : > { %1897 = vmatprep.subr.bf16.mxu1 %v2043_v27 }
 0x2fd   : > { %1898 = vmatpush3.bf16.msra.mxu1 %v2043_v27 }
 0x3a0   : > { %v1837_v32 = vpop.f32.mrf.mxu1 }
 0x3a1   : > { %v981_v38 = vadd.f32 %v1837_v32, %v1593_v34 }
 0x3a2   : > { %v972_v33 = vpop.f32.mrf.mxu1 }
 0x3a3   : > { %v973_v36 = vadd.f32 %v1593_v34, %v972_v33  ;;  %v1037_v45 = vmax.f32 %v981_v38, 0.0 }
 0x3a4   : > { %v1838_v35 = vpop.f32.mrf.mxu1 }
 0x3a5   : > { %v984_v37 = vadd.f32 %v1838_v35, %v1593_v34  ;;  %v1035_v43 = vmax.f32 %v973_v36, 0.0 }
 0x3a6   : > { %v975_v39 = vpop.f32.mrf.mxu1 }
 0x3a7   : > { %v976_v40 = vadd.f32 %v1593_v34, %v975_v39  ;;  %v1038_v41 = vmax.f32 %v984_v37, 0.0 }
 0x3a8   : > { %v1841_v42 = vpop.f32.mrf.mxu1 }
 0x3a9   : > { %v1036_v44 = vmax.f32 %v976_v40, 0.0  ;;  %v1052_v48 = vpack.c.bf16 %v1038_v41, %v1037_v45  ;;  %v997_v52 = vadd.f32 %v1841_v42, %v1593_v34 }
 0x3aa   : > { %v988_v46 = vpop.f32.mrf.mxu1 }
 0x3ab   : > { %v1051_v47 = vpack.c.bf16 %v1036_v44, %v1035_v43  ;;  %v989_v50 = vadd.f32 %v1593_v34, %v988_v46  ;;  %v1041_v59 = vmax.f32 %v997_v52, 0.0 }
 0x3ac   : > { %v1842_v49 = vpop.f32.mrf.mxu1 }
 0x3ad   : > { %v1000_v51 = vadd.f32 %v1842_v49, %v1593_v34  ;;  %1867 = vmatprep.mubr.bf16.mxu0 %v1051_v47  ;;  %v1039_v57 = vmax.f32 %v989_v50, 0.0 }
 0x3ae   : > { %v991_v53 = vpop.f32.mrf.mxu1  ;;  %1868 = vmatmul.mubr.bf16.vlgmr.msra.gmra.mxu0 %v1052_v48 }
 0x3af   : > { %v992_v54 = vadd.f32 %v1593_v34, %v991_v53  ;;  %v1042_v55 = vmax.f32 %v1000_v51, 0.0 }
 0x3b0   : > { %v1845_v56 = vpop.f32.mrf.mxu1 }
 0x3b1   : > { %v1040_v58 = vmax.f32 %v992_v54, 0.0  ;;  %v1054_v62 = vpack.c.bf16 %v1042_v55, %v1041_v59  ;;  %v1013_v2 = vadd.f32 %v1845_v56, %v1593_v34 }
 0x3b2   : > { %v1004_v60 = vpop.f32.mrf.mxu1 }
 0x3b3   : > { %v1053_v61 = vpack.c.bf16 %v1040_v58, %v1039_v57  ;;  %v1005_v0 = vadd.f32 %v1593_v34, %v1004_v60  ;;  %v1045_v9 = vmax.f32 %v1013_v2, 0.0 }
 0x3b4   : > { %v1846_v63 = vpop.f32.mrf.mxu1 }
 0x3b5   : > { %v1016_v1 = vadd.f32 %v1846_v63, %v1593_v34  ;;  %1871 = vmatprep.mubr.bf16.mxu0 %v1053_v61  ;;  %v1043_v7 = vmax.f32 %v1005_v0, 0.0 }
 0x3b6   : > { %v1007_v3 = vpop.f32.mrf.mxu1  ;;  %1872 = vmatmul.mubr.bf16.gmra.mxu0 %v1054_v62 }
 0x3b7   : > { %v1008_v4 = vadd.f32 %v1593_v34, %v1007_v3  ;;  %v1046_v5 = vmax.f32 %v1016_v1, 0.0 }
 0x3b8   : > { %v1849_v6 = vpop.f32.mrf.mxu1 }
 0x3b9   : > { %v1044_v8 = vmax.f32 %v1008_v4, 0.0  ;;  %v1056_v12 = vpack.c.bf16 %v1046_v5, %v1045_v9  ;;  %v1029_v16 = vadd.f32 %v1849_v6, %v1593_v34 }
 0x3ba   : > { %v1020_v10 = vpop.f32.mrf.mxu1 }
 0x3bb   : > { %v1055_v11 = vpack.c.bf16 %v1044_v8, %v1043_v7  ;;  %v1021_v14 = vadd.f32 %v1593_v34, %v1020_v10  ;;  %v1049_v22 = vmax.f32 %v1029_v16, 0.0 }
 0x3bc   : > { %v1850_v13 = vpop.f32.mrf.mxu1 }
 0x3bd   : > { %v1032_v15 = vadd.f32 %v1850_v13, %v1593_v34  ;;  %1875 = vmatprep.mubr.bf16.mxu0 %v1055_v11  ;;  %v1047_v20 = vmax.f32 %v1021_v14, 0.0 }
 0x3be   : > { %v1023_v17 = vpop.f32.mrf.mxu1  ;;  %1876 = vmatmul.mubr.bf16.gmra.mxu0 %v1056_v12 }
 0x3bf   : > { %v1024_v18 = vadd.f32 %v1593_v34, %v1023_v17  ;;  %v1050_v19 = vmax.f32 %v1032_v15, 0.0 }
 0x3c1   : > { %v1048_v21 = vmax.f32 %v1024_v18, 0.0  ;;  %v1058_v24 = vpack.c.bf16 %v1050_v19, %v1049_v22 }
 0x3c3   : > { %v1057_v23 = vpack.c.bf16 %v1048_v21, %v1047_v20  ;;  %v1611_v21 = vld [vmem:[#allocation7 + $0x5] ss:$0 sm:$0xff] }
 0x3c5   : > { %1879 = vmatprep.mubr.bf16.mxu0 %v1057_v23 }
 0x3c6   : > { %1880 = vmatmul.mubr.bf16.gmra.mxu0 %v1058_v24 }
 0x46e   : > { %v1869_v28 = vpop.f32.mrf.mxu0 }
 0x46f   : > { %v1175_v34 = vadd.f32 %v1869_v28, %v1602_v30 }
 0x470   : > { %v1166_v29 = vpop.f32.mrf.mxu0 }
 0x471   : > { %v1167_v32 = vadd.f32 %v1602_v30, %v1166_v29  ;;  %v1231_v41 = vmax.f32 %v1175_v34, 0.0 }
 0x472   : > { %v1870_v31 = vpop.f32.mrf.mxu0 }
 0x473   : > { %v1178_v33 = vadd.f32 %v1870_v31, %v1602_v30  ;;  %v1229_v39 = vmax.f32 %v1167_v32, 0.0 }
 0x474   : > { %v1169_v35 = vpop.f32.mrf.mxu0 }
 0x475   : > { %v1170_v36 = vadd.f32 %v1602_v30, %v1169_v35  ;;  %v1232_v37 = vmax.f32 %v1178_v33, 0.0 }
 0x476   : > { %v1873_v38 = vpop.f32.mrf.mxu0 }
 0x477   : > { %v1230_v40 = vmax.f32 %v1170_v36, 0.0  ;;  %v1246_v44 = vpack.c.bf16 %v1232_v37, %v1231_v41  ;;  %v1191_v48 = vadd.f32 %v1873_v38, %v1602_v30 }
 0x478   : > { %v1182_v42 = vpop.f32.mrf.mxu0 }
 0x479   : > { %v1245_v43 = vpack.c.bf16 %v1230_v40, %v1229_v39  ;;  %v1183_v46 = vadd.f32 %v1602_v30, %v1182_v42  ;;  %v1235_v55 = vmax.f32 %v1191_v48, 0.0 }
 0x47a   : > { %v1874_v45 = vpop.f32.mrf.mxu0 }
 0x47b   : > { %v1194_v47 = vadd.f32 %v1874_v45, %v1602_v30  ;;  %1899 = vmatprep.mubr.bf16.mxu1 %v1245_v43  ;;  %v1233_v53 = vmax.f32 %v1183_v46, 0.0 }
 0x47c   : > { %v1185_v49 = vpop.f32.mrf.mxu0  ;;  %1900 = vmatmul.mubr.bf16.vlgmr.msra.gmra.mxu1 %v1246_v44 }
 0x47d   : > { %v1186_v50 = vadd.f32 %v1602_v30, %v1185_v49  ;;  %v1236_v51 = vmax.f32 %v1194_v47, 0.0 }
 0x47e   : > { %v1877_v52 = vpop.f32.mrf.mxu0 }
 0x47f   : > { %v1234_v54 = vmax.f32 %v1186_v50, 0.0  ;;  %v1248_v58 = vpack.c.bf16 %v1236_v51, %v1235_v55  ;;  %v1207_v62 = vadd.f32 %v1877_v52, %v1602_v30 }
 0x480   : > { %v1198_v56 = vpop.f32.mrf.mxu0 }
 0x481   : > { %v1247_v57 = vpack.c.bf16 %v1234_v54, %v1233_v53  ;;  %v1199_v60 = vadd.f32 %v1602_v30, %v1198_v56  ;;  %v1239_v5 = vmax.f32 %v1207_v62, 0.0 }
 0x482   : > { %v1878_v59 = vpop.f32.mrf.mxu0 }
 0x483   : > { %v1210_v61 = vadd.f32 %v1878_v59, %v1602_v30  ;;  %1903 = vmatprep.mubr.bf16.mxu1 %v1247_v57  ;;  %v1237_v3 = vmax.f32 %v1199_v60, 0.0 }
 0x484   : > { %v1201_v63 = vpop.f32.mrf.mxu0  ;;  %1904 = vmatmul.mubr.bf16.gmra.mxu1 %v1248_v58 }
 0x485   : > { %v1202_v0 = vadd.f32 %v1602_v30, %v1201_v63  ;;  %v1240_v1 = vmax.f32 %v1210_v61, 0.0 }
 0x486   : > { %v1881_v2 = vpop.f32.mrf.mxu0 }
 0x487   : > { %v1238_v4 = vmax.f32 %v1202_v0, 0.0  ;;  %v1250_v8 = vpack.c.bf16 %v1240_v1, %v1239_v5  ;;  %v1223_v12 = vadd.f32 %v1881_v2, %v1602_v30 }
 0x488   : > { %v1214_v6 = vpop.f32.mrf.mxu0 }
 0x489   : > { %v1249_v7 = vpack.c.bf16 %v1238_v4, %v1237_v3  ;;  %v1215_v10 = vadd.f32 %v1602_v30, %v1214_v6  ;;  %v1243_v18 = vmax.f32 %v1223_v12, 0.0 }
 0x48a   : > { %v1882_v9 = vpop.f32.mrf.mxu0 }
 0x48b   : > { %v1226_v11 = vadd.f32 %v1882_v9, %v1602_v30  ;;  %1907 = vmatprep.mubr.bf16.mxu1 %v1249_v7  ;;  %v1241_v16 = vmax.f32 %v1215_v10, 0.0 }
 0x48c   : > { %v1217_v13 = vpop.f32.mrf.mxu0  ;;  %1908 = vmatmul.mubr.bf16.gmra.mxu1 %v1250_v8 }
 0x48d   : > { %v1218_v14 = vadd.f32 %v1602_v30, %v1217_v13  ;;  %v1244_v15 = vmax.f32 %v1226_v11, 0.0 }
 0x48f   : > { %v1242_v17 = vmax.f32 %v1218_v14, 0.0  ;;  %v1252_v20 = vpack.c.bf16 %v1244_v15, %v1243_v18 }
 0x491   : > { %v1251_v19 = vpack.c.bf16 %v1242_v17, %v1241_v16 }
 0x493   : > { %1911 = vmatprep.mubr.bf16.mxu1 %v1251_v19 }
 0x494   : > { %1912 = vmatmul.mubr.bf16.gmra.mxu1 %v1252_v20 }
 0x53c   : > { %v1901_v22 = vpop.f32.mrf.mxu1 }
 0x53d   : > { %v1369_v23 = vadd.f32 %v1901_v22, %v1611_v21 }
 0x53e   : > { %v1360_v24 = vpop.f32.mrf.mxu1 }
 0x53f   : > { %1425 = vst [vmem:[%s2380_s20 + $0x10] sm:$0xff] %v1369_v23  ;;  %v1361_v25 = vadd.f32 %v1611_v21, %v1360_v24 }
 0x540   : > { %v1902_v26 = vpop.f32.mrf.mxu1 }
 0x541   : > { %1423 = vst [vmem:[%s2380_s20] sm:$0xff] %v1361_v25  ;;  %v1372_v27 = vadd.f32 %v1902_v26, %v1611_v21 }
 0x542   : > { %v1363_v28 = vpop.f32.mrf.mxu1 }
 0x543   : > { %1426 = vst [vmem:[%s2380_s20 + $0x18] sm:$0xff] %v1372_v27  ;;  %v1364_v29 = vadd.f32 %v1611_v21, %v1363_v28 }
 0x544   : > { %v1905_v30 = vpop.f32.mrf.mxu1 }
 0x545   : > { %1424 = vst [vmem:[%s2380_s20 + $0x8] sm:$0xff] %v1364_v29  ;;  %v1385_v31 = vadd.f32 %v1905_v30, %v1611_v21 }
 0x546   : > { %v1376_v32 = vpop.f32.mrf.mxu1 }
 0x547   : > { %1429 = vst [vmem:[%s2380_s20 + $0x30] sm:$0xff] %v1385_v31  ;;  %v1377_v33 = vadd.f32 %v1611_v21, %v1376_v32 }
 0x548   : > { %v1906_v34 = vpop.f32.mrf.mxu1 }
 0x549   : > { %1427 = vst [vmem:[%s2380_s20 + $0x20] sm:$0xff] %v1377_v33  ;;  %v1388_v35 = vadd.f32 %v1906_v34, %v1611_v21 }
 0x54a   : > { %v1379_v36 = vpop.f32.mrf.mxu1 }
 0x54b   : > { %1430 = vst [vmem:[%s2380_s20 + $0x38] sm:$0xff] %v1388_v35  ;;  %v1380_v37 = vadd.f32 %v1611_v21, %v1379_v36 }
 0x54c   : > { %v1909_v38 = vpop.f32.mrf.mxu1 }
 0x54d   : > { %1428 = vst [vmem:[%s2380_s20 + $0x28] sm:$0xff] %v1380_v37  ;;  %v1401_v39 = vadd.f32 %v1909_v38, %v1611_v21 }
 0x54e   : > { %v1392_v40 = vpop.f32.mrf.mxu1 }
 0x54f   : > { %1433 = vst [vmem:[%s2380_s20 + $0x50] sm:$0xff] %v1401_v39  ;;  %v1393_v41 = vadd.f32 %v1611_v21, %v1392_v40 }
 0x550   : > { %v1910_v42 = vpop.f32.mrf.mxu1 }
 0x551   : > { %1431 = vst [vmem:[%s2380_s20 + $0x40] sm:$0xff] %v1393_v41  ;;  %v1404_v43 = vadd.f32 %v1910_v42, %v1611_v21 }
 0x552   : > { %v1395_v44 = vpop.f32.mrf.mxu1 }
 0x553   : > { %1434 = vst [vmem:[%s2380_s20 + $0x58] sm:$0xff] %v1404_v43  ;;  %v1396_v45 = vadd.f32 %v1611_v21, %v1395_v44 }
 0x554   : > { %v1913_v46 = vpop.f32.mrf.mxu1 }
 0x555   : > { %1432 = vst [vmem:[%s2380_s20 + $0x48] sm:$0xff] %v1396_v45  ;;  %v1417_v47 = vadd.f32 %v1913_v46, %v1611_v21 }
 0x556   : > { %v1408_v48 = vpop.f32.mrf.mxu1 }
 0x557   : > { %1437 = vst [vmem:[%s2380_s20 + $0x70] sm:$0xff] %v1417_v47  ;;  %v1409_v49 = vadd.f32 %v1611_v21, %v1408_v48 }
 0x558   : > { %v1914_v50 = vpop.f32.mrf.mxu1 }
 0x559   : > { %1435 = vst [vmem:[%s2380_s20 + $0x60] sm:$0xff] %v1409_v49  ;;  %v1420_v51 = vadd.f32 %v1914_v50, %v1611_v21 }
 0x55a   : > { %v1411_v52 = vpop.f32.mrf.mxu1 }
 0x55b   : > { %1438 = vst [vmem:[%s2380_s20 + $0x78] sm:$0xff] %v1420_v51  ;;  %v1412_v53 = vadd.f32 %v1611_v21, %v1411_v52 }
 0x55d   : > { %1436 = vst [vmem:[%s2380_s20 + $0x68] sm:$0xff] %v1412_v53 }
 0x55e   : > { %2137 = shalt.err (!%p2134_p3)
}
 0x55f   : > { %s2138_s25 = scalar_lea.hbm %s2401_s5, 2048  ;;  %s2142_s8 = scalar_lea.hbm %s2451_s3, 4096 }
 0x560   : > { %p2139_p11 = scmp.ne.s32.totalorder %s2401_s5, %s2138_s25  ;;  %p2143_p4 = scmp.lt.s32.totalorder %s2401_s5, %s2451_s3 }
 0x561   : > { %p2144_p6 = scmp.lt.s32.totalorder %s2142_s8, %s2138_s25 }
 0x562   : > { %p2140_p9 = pnand %p2139_p11, %p2466_p2 }
 0x563   : > { %p2145_p8 = por %p2144_p6, %p2143_p4 }
 0x564   : > { %p2141_p1 = pneg %p2140_p9 }
 0x566   : > { %p2146_p10 = pnand %p2145_p8, %p2141_p1 }
 0x568   : > { %2149 = shalt.err (!%p2146_p10)
}
 0x569   : > { %s2202_s18 = smov 128   ;;  %s2203_s20 = smov 8  }
 0x56a   : > { %1925 = dma.vmem_to_hbm [thread:$0]  (%p2466_p2), %s2403_s28, 2048, %s2401_s5, %s1440_s6, %s2202_s18, %s2202_s18, %s2203_s20  }
 0x56b PF: > { %s1468_s27 = sand.u32 1, %s2180_s12   ;;  %p2467_p7 = scmp.ne.s32.totalorder %s2457_s19, 0 }
 0x56c   : > { %p2468_p12 = scmp.ge.s32.totalorder %s2192_s15, 2  ;;  %s1469_s29 = scalar_lea.sflag [#allocation4], %s1468_s27 }
 0x56e   : > { %p1939_p13 = pnand %p2468_p12, %p2467_p7 }
 0x570   : > { %p1940_p0 = pneg %p1939_p13 }
 0x572   : > { %2175 = dma.done.wait (%p1940_p0), %s1469_s29, 2048  }
 0x573   : > { %2177 = vsyncadd (%p1940_p0), %s1469_s29, 4294965248  ;;  %p17_p5 = scmp.ge.s32.totalorder %s2299_s9, 4   ;;  %s2469_s12 = smov %s2184_s13 }
 0x574   : > { %s2470_s13 = smov %s2188_s14  ;;  %s2471_s14 = smov %s2308_s17 }
 0x575   : > { %s2472_s15 = smov %s2299_s9  ;;  %19 = sbr.rel (!%p17_p5) target bundleno = 6 (0x6), region = 95 }
 0x57a   :  { %1474 = vsyncpa [#allocation3], 1 }
 0x57b   :  { %1476 = vsyncpa [#allocation3 + $0x1], 1 }
 0x57c   :  { %1477 = vsyncpa [#allocation6], 1 }
 0x57d   :  { %1478 = vsyncpa [#allocation4], 1 }
 0x57e   :  { %1480 = vsyncpa [#allocation4 + $0x1], 1 }

</bundles_post_ra>
